<compile_context>
chip_gen: v7x
topology: tpu7x:2x2x1
jax: 0.10.0
libtpu: 0.0.40
codegen_flags: <defaults>
</compile_context>

<pallas_src>
import jax
import jax.numpy as jnp
from jax.experimental import pallas as pl
from jax.experimental.pallas import tpu as pltpu

BATCH_TILE = 8192   # batch rows per grid step (sweep 2048-8192; 8192 is fine here)
SMALL_BATCH = 4096  # below this a fused XLA dot beats the kernel-launch overhead


def _policy_kernel(x_ref, w_ref, o_ref):
    # x_ref: [bt, 3]   raw (unpadded) input rows
    # w_ref: [3, 2]    combined weight Wc = (W2 @ W1)^T, VMEM-resident
    # o_ref: [bt, 2]
    x = x_ref[...]
    w = w_ref[...]
    # x @ Wc as 3 VPU broadcast multiply-adds (K=3, N=2: skip the MXU).
    # Reduction is over columns only, so garbage rows in a masked remainder
    # block never contaminate real rows.
    o_ref[...] = (x[:, 0:1] * w[0:1, :]
                  + x[:, 1:2] * w[1:2, :]
                  + x[:, 2:3] * w[2:3, :])


def dummy_policy_forward(x, w1, w2, *, use_pallas=None):
    """x: [B, 3] float32; w1: [2, 3]; w2: [2, 2] -> [B, 2]."""
    x = x.astype(jnp.float32)
    B, in_f = x.shape
    assert in_f == 3, "DummyPolicy expects 3 input features"
    out_f = w2.shape[0]  # 2

    # Fold the two bias-free linears into one [3, 2] weight (constant-folds
    # under jit when the weights are static).
    wc = (w2.astype(jnp.float32) @ w1.astype(jnp.float32)).T  # [3, 2]

    if use_pallas is None:
        use_pallas = B >= SMALL_BATCH
    if not use_pallas:
        # Tiny batches: a fused XLA dot is strictly faster than a kernel launch.
        return x @ wc

    out_shape = jax.ShapeDtypeStruct((B, out_f), jnp.float32)

    if B <= BATCH_TILE:
        # Single tile: gridless call, whole arrays are one block
        # (full-extent dims are always legal, no (8,128) rounding needed).
        return pl.pallas_call(_policy_kernel, out_shape=out_shape)(x, wc)

    # Multi-tile: balance the batch across >= 2 "parallel" tiles so v7x's two
    # TensorCores both get work; remainder block is masked by Pallas.
    num_tiles = max(pl.cdiv(B, BATCH_TILE), 2)
    bt = pl.cdiv(pl.cdiv(B, num_tiles), 8) * 8      # sublane-aligned tile
    num_tiles = pl.cdiv(B, bt)

    return pl.pallas_call(
        _policy_kernel,
        out_shape=out_shape,
        grid=(num_tiles,),
        in_specs=[
            pl.BlockSpec((bt, in_f), lambda i: (i, 0)),
            pl.BlockSpec((in_f, out_f), lambda i: (0, 0)),  # weight VMEM-resident
        ],
        out_specs=pl.BlockSpec((bt, out_f), lambda i: (i, 0)),
        compiler_params=pltpu.CompilerParams(
            dimension_semantics=("parallel",)),
    )(x, wc)


if __name__ == "__main__":
    key = jax.random.PRNGKey(0)
    kx, k1, k2 = jax.random.split(key, 3)

    # Small deterministic inputs / params (shapes implied by the module).
    B = 2
    x = jax.random.normal(kx, (B, 3), dtype=jnp.float32)
    w1 = jax.random.normal(k1, (2, 3), dtype=jnp.float32) * 0.5  # Linear(3, 2)
    w2 = jax.random.normal(k2, (2, 2), dtype=jnp.float32) * 0.5  # Linear(2, 2)

    # Force the Pallas path so the kernel itself is exercised at small batch.
    out = dummy_policy_forward(x, w1, w2, use_pallas=True)
    jax.block_until_ready(out)

    # Pure-JAX reference (original two-matmul formulation).
    ref = (x @ w1.T) @ w2.T
    assert out.shape == (B, 2)
    assert jnp.allclose(out, ref, atol=1e-5, rtol=1e-5), (out, ref)

    # Also exercise the batch-tiled (gridded, remainder-masked) path.
    B2 = 20000
    x2 = jax.random.normal(kx, (B2, 3), dtype=jnp.float32)
    out2 = dummy_policy_forward(x2, w1, w2)
    jax.block_until_ready(out2)
    ref2 = (x2 @ w1.T) @ w2.T
    assert out2.shape == (B2, 2)
    assert jnp.allclose(out2, ref2, atol=1e-5, rtol=1e-5)

    print("KERNEL_OK")
</pallas_src>

<mosaic_0001>
module attributes {stable_mosaic.version = 11 : i64} {
  func.func @_policy_kernel(%arg0: memref<2x3xf32, #tpu.memory_space<vmem>>, %arg1: memref<3x2xf32, #tpu.memory_space<vmem>>, %arg2: memref<2x2xf32, #tpu.memory_space<vmem>>) attributes {dimension_semantics = [], scalar_prefetch = 0 : i64, scratch_operands = 0 : i64, tpu.core_type = #tpu.core_type<tc>} {
    %c0 = arith.constant 0 : index
    %c0_0 = arith.constant 0 : index
    %0 = vector.load %arg0[%c0, %c0_0] : memref<2x3xf32, #tpu.memory_space<vmem>>, vector<2x3xf32>
    %c0_1 = arith.constant 0 : index
    %c0_2 = arith.constant 0 : index
    %1 = vector.load %arg1[%c0_1, %c0_2] : memref<3x2xf32, #tpu.memory_space<vmem>>, vector<3x2xf32>
    %2 = vector.extract_strided_slice %0 {offsets = [0, 0], sizes = [2, 1], strides = [1, 1]} : vector<2x3xf32> to vector<2x1xf32>
    %3 = vector.extract_strided_slice %1 {offsets = [0, 0], sizes = [1, 2], strides = [1, 1]} : vector<3x2xf32> to vector<1x2xf32>
    %4 = vector.broadcast %2 : vector<2x1xf32> to vector<2x2xf32>
    %5 = vector.broadcast %3 : vector<1x2xf32> to vector<2x2xf32>
    %6 = arith.mulf %4, %5 : vector<2x2xf32>
    %7 = vector.extract_strided_slice %0 {offsets = [0, 1], sizes = [2, 1], strides = [1, 1]} : vector<2x3xf32> to vector<2x1xf32>
    %8 = vector.extract_strided_slice %1 {offsets = [1, 0], sizes = [1, 2], strides = [1, 1]} : vector<3x2xf32> to vector<1x2xf32>
    %9 = vector.broadcast %7 : vector<2x1xf32> to vector<2x2xf32>
    %10 = vector.broadcast %8 : vector<1x2xf32> to vector<2x2xf32>
    %11 = arith.mulf %9, %10 : vector<2x2xf32>
    %12 = arith.addf %6, %11 : vector<2x2xf32>
    %13 = vector.extract_strided_slice %0 {offsets = [0, 2], sizes = [2, 1], strides = [1, 1]} : vector<2x3xf32> to vector<2x1xf32>
    %14 = vector.extract_strided_slice %1 {offsets = [2, 0], sizes = [1, 2], strides = [1, 1]} : vector<3x2xf32> to vector<1x2xf32>
    %15 = vector.broadcast %13 : vector<2x1xf32> to vector<2x2xf32>
    %16 = vector.broadcast %14 : vector<1x2xf32> to vector<2x2xf32>
    %17 = arith.mulf %15, %16 : vector<2x2xf32>
    %18 = arith.addf %12, %17 : vector<2x2xf32>
    %c0_3 = arith.constant 0 : index
    %c0_4 = arith.constant 0 : index
    %19 = vector.load %arg2[%c0_3, %c0_4] : memref<2x2xf32, #tpu.memory_space<vmem>>, vector<2x2xf32>
    tpu.vector_store %arg2[%c0_3, %c0_4], %18 {strides = array<i32>} : memref<2x2xf32, #tpu.memory_space<vmem>>, vector<2x2xf32>,
    return
  }
}

</mosaic_0001>

<bundles_post_ra>
// kernel: tpu_custom_call.1
= control target key start
LH: loop header
LB: loop body
LE: loop exit
PB: predicated region body
PF: predicated region fallthrough
CT: control target
= control target key end

     0   :  { %v92_v1 = vmov 0   ;;  %v93_v2 = vmov 2   ;;  %s129_s0 = inlined_call_operand.vmem [shape: f32[2,3], index: 0, kind: input, shape index: {}]   ;;  %s130_s1 = inlined_call_operand.vmem [shape: f32[3,2], index: 1, kind: input, shape index: {}]   ;;  %s131_s2 = inlined_call_operand.hbm [shape: f32[2,2], index: 2, kind: output, shape index: {}]  }
   0x1   :  { %v12_v0 = vld [vmem:[%s129_s0] sm:$0x3]  ;;  %64 = vset.pattern.permute.xlu0 %v92_v1  ;;  %66 = vset.pattern.permute.xlu1 %v93_v2 }
   0x2   :  { %7 = vsyncpa [#allocation3], 0  ;;  %16 = vperm.xlu0 %64, %v12_v0   ;;  %35 = vperm.xlu1 %66, %v12_v0   ;;  %v94_v3 = vmov 1   ;;  %v19_v4 = vlaneseq  ;;  %v13_v9 = vld [vmem:[%s130_s1] sm:$0x7]  ;;  %s95_s0 = smov [#allocation2]  }
   0x3   :  { %s52_s13 = sshll.u32 %s95_s0, 4  ;;  %vm44_vm0 = vcmask 9216   ;;  %s53_s13 = int_to_ptr.vmem [resolvable:$true] %s52_s13 }
   0x4   :  { %v20_v5 = vshrl.u32 %v19_v4, 7  ;;  %s68_s14 = scalar_lea.vmem %s53_s13, 32  ;;  %p73_p1 = scmp.lt.s32.totalorder %s53_s13, %s53_s13 }
   0x5   :  { %p69_p0 = scmp.ne.s32.totalorder %s53_s13, %s68_s14  ;;  %p74_p2 = scmp.lt.s32.totalorder %s68_s14, %s68_s14 }
   0x6   :  { %65 = vset.pattern.permute.xlu0 %v94_v3  ;;  %v21_v6 = vsub.s32 0, %v20_v5  ;;  %v30_v7 = vsub.s32 1, %v20_v5  ;;  %v40_v8 = vsub.s32 2, %v20_v5 }
   0x7   :  { %25 = vperm.xlu0 %65, %v12_v0   ;;  %p75_p3 = por %p74_p2, %p73_p1 }
   0x8   :  { %v22_v11 = vrot.slane %v13_v9, %v21_v6  ;;  %v31_v12 = vrot.slane %v13_v9, %v30_v7  ;;  %v41_v13 = vrot.slane %v13_v9, %v40_v8 }
   0x9   :  { %p76_p4 = pnand %p75_p3, %p69_p0 }
   0xb   :  { %67 = vset.pattern.permute.xlu0 %v93_v2 }
  0x81   :  { %v17_v10 = vpop.permute.xlu0 %16  ;;  %v36_v14 = vpop.permute.xlu1 %35 }
  0x82   :  { %v23_v16 = vmul.f32 %v22_v11, %v17_v10  ;;  %v42_v18 = vmul.f32 %v41_v13, %v36_v14 }
  0x86   :  { %v26_v15 = vpop.permute.xlu0 %25 }
  0x87   :  { %v32_v17 = vmul.f32 %v31_v12, %v26_v15 }
  0x89   :  { %v33_v19 = vadd.f32 %v32_v17, %v23_v16 }
  0x8b   :  { %v43_v20 = vadd.f32 %v42_v18, %v33_v19 }
  0x8d   :  { %45 = vst.msk [vmem:[#allocation2] sm:$0x3] %vm44_vm0, %v43_v20 }
  0x8e   :  { %79 = shalt.err (!%p76_p4)
}
  0x8f   :  { %s80_s16 = scalar_lea.hbm %s131_s2, 32 }
  0x90   :  { %p81_p5 = scmp.ne.s32.totalorder %s131_s2, %s80_s16  ;;  %p84_p6 = scmp.lt.u32.totalorder %s80_s16, %s131_s2 }
  0x92   :  { %p86_p7 = pnand %p84_p6, %p81_p5 }
  0x94   :  { %89 = shalt.err (!%p86_p7)
}
  0x95   :  { %55 = dma.vmem_to_hbm [thread:$0]  %s53_s13, 32, %s131_s2, [#allocation3]  }
  0x96   :  { %90 = dma.done.wait [#allocation3], 32  }
  0x97   :  { %91 = vsyncadd [#allocation3], 4294967264 }
  0x98   :  { %59 = vsyncpa [#allocation3], 1 }

</bundles_post_ra>
